<compile_context>
chip_gen: v6e
topology: v6e:2x2x1
jax: 0.10.0
libtpu: 0.0.40
codegen_flags: <defaults>
</compile_context>

<pallas_src>
import jax
import jax.numpy as jnp
from jax.experimental import pallas as pl
from jax.experimental.pallas import tpu as pltpu


def _se_attention_kernel(x_ref, w1t_ref, w2t_ref, o_ref):
    # x_ref  : (Bt, C, HW)   batch tile; channels on sublanes, pixels on lanes
    # w1t_ref: (C, Ch)       fc1 weight pre-transposed   (Ch = C // reduction)
    # w2t_ref: (Ch, C)       fc2 weight pre-transposed
    # o_ref  : (Bt, C, HW)
    xb = x_ref[...]                                        # keep input dtype

    # --- squeeze: spatial mean per (batch, channel); accumulate in f32.
    pooled = jnp.mean(xb.astype(jnp.float32), axis=-1)     # (Bt, C)

    # --- excitation: two tiny bias-free FCs for the whole batch tile at once.
    w1t = w1t_ref[...].astype(jnp.float32)                 # (C, Ch)
    w2t = w2t_ref[...].astype(jnp.float32)                 # (Ch, C)
    h = jnp.maximum(
        jnp.dot(pooled, w1t, preferred_element_type=jnp.float32), 0.0)   # (Bt, Ch)
    s = jax.nn.sigmoid(
        jnp.dot(h, w2t, preferred_element_type=jnp.float32))             # (Bt, C)

    # --- scale: broadcast the per-channel gate over HW lanes, in input dtype.
    gate = s.astype(xb.dtype)[:, :, None]                  # (Bt, C, 1)
    o_ref[...] = (xb * gate).astype(o_ref.dtype)


def se_attention(x_nchw, fc1_weight, fc2_weight, *, target_block_bytes=2 << 20):
    """x_nchw: (B, C, H, W); fc1_weight: (C//r, C); fc2_weight: (C, C//r).
    Returns (B, C, H, W) matching the PyTorch SEAttention forward."""
    B, C, H, W = x_nchw.shape
    hidden = fc1_weight.shape[0]
    HW = H * W

    x_flat = x_nchw.reshape(B, C, HW)          # free row-major reshape
    w1_t = jnp.transpose(fc1_weight)           # (C, hidden) -- tiny, hoisted
    w2_t = jnp.transpose(fc2_weight)           # (hidden, C) -- tiny, hoisted

    # Batch-tile size: biggest Bt such that one block is ~target_block_bytes
    # (default 2 MiB => 4x double-buffered in+out = 8 MiB, safe on v5e/v6e/v7x).
    itemsize = jnp.dtype(x_nchw.dtype).itemsize
    bytes_per_batch = C * HW * itemsize
    bt = int(max(1, min(B, target_block_bytes // max(bytes_per_batch, 1))))
    grid_b = pl.cdiv(B, bt)

    # Raise scoped VMEM only if a caller-requested block actually needs it.
    block_bytes = bt * bytes_per_batch
    vmem_needed = 4 * block_bytes + 2 * C * hidden * 4 + (1 << 20)
    vmem_limit = int(vmem_needed) if vmem_needed > (16 << 20) else None

    out_flat = pl.pallas_call(
        _se_attention_kernel,
        out_shape=jax.ShapeDtypeStruct((B, C, HW), x_nchw.dtype),
        grid_spec=pltpu.PrefetchScalarGridSpec(
            num_scalar_prefetch=0,
            grid=(grid_b,),
            in_specs=[
                pl.BlockSpec((bt, C, HW), lambda b: (b, 0, 0)),
                pl.BlockSpec((C, hidden), lambda b: (0, 0)),   # VMEM-resident
                pl.BlockSpec((hidden, C), lambda b: (0, 0)),   # VMEM-resident
            ],
            out_specs=pl.BlockSpec((bt, C, HW), lambda b: (b, 0, 0)),
        ),
        compiler_params=pltpu.CompilerParams(
            dimension_semantics=("parallel",),
            vmem_limit_bytes=vmem_limit,
        ),
    )(x_flat, w1_t, w2_t)

    return out_flat.reshape(B, C, H, W)        # free reshape back


def _reference(x, fc1_w, fc2_w):
    pooled = jnp.mean(x, axis=(2, 3))                           # (B, C)
    h = jnp.maximum(pooled @ fc1_w.T, 0.0)                      # (B, hidden)
    s = jax.nn.sigmoid(h @ fc2_w.T)                             # (B, C)
    return x * s[:, :, None, None]


if __name__ == "__main__":
    # Module config: SEAttention(channel=32, reduction=4) -> hidden = 8
    B, C, H, W = 2, 32, 16, 16
    reduction = 4
    hidden = C // reduction

    key = jax.random.PRNGKey(0)
    kx, k1, k2, kx2 = jax.random.split(key, 4)
    x = jax.random.normal(kx, (B, C, H, W), dtype=jnp.float32)
    fc1_w = 0.1 * jax.random.normal(k1, (hidden, C), dtype=jnp.float32)  # Linear(C -> C//r)
    fc2_w = 0.1 * jax.random.normal(k2, (C, hidden), dtype=jnp.float32)  # Linear(C//r -> C)

    out = jax.block_until_ready(se_attention(x, fc1_w, fc2_w))
    ref = _reference(x, fc1_w, fc2_w)
    assert out.shape == (B, C, H, W)
    assert jnp.allclose(out, ref, atol=1e-5, rtol=1e-5)

    # Second check: larger batch to exercise the batch-tiled grid, including a
    # partial last block (B=70 with Bt=64 -> grid=(2,), second block ragged).
    B2 = 70
    x2 = jax.random.normal(kx2, (B2, C, H, W), dtype=jnp.float32)
    out2 = jax.block_until_ready(se_attention(x2, fc1_w, fc2_w))
    ref2 = _reference(x2, fc1_w, fc2_w)
    assert out2.shape == (B2, C, H, W)
    assert jnp.allclose(out2, ref2, atol=1e-5, rtol=1e-5)

    print("KERNEL_OK")
</pallas_src>

<mosaic_0001>
module attributes {stable_mosaic.version = 11 : i64} {
  func.func @_se_attention_kernel(%arg0: i32, %arg1: memref<2x32x256xf32, #tpu.memory_space<vmem>>, %arg2: memref<32x8xf32, #tpu.memory_space<vmem>>, %arg3: memref<8x32xf32, #tpu.memory_space<vmem>>, %arg4: memref<2x32x256xf32, #tpu.memory_space<vmem>>) attributes {dimension_semantics = [#tpu.dimension_semantics<parallel>], iteration_bounds = array<i64: 1>, scalar_prefetch = 0 : i64, scratch_operands = 0 : i64, tpu.core_type = #tpu.core_type<tc>, window_params = [{transform_indices = @transform_0, window_bounds = array<i64: 2, 32, 256>}, {pipeline_mode = #tpu.pipeline_mode<synchronous>, transform_indices = @transform_1, window_bounds = array<i64: 32, 8>}, {pipeline_mode = #tpu.pipeline_mode<synchronous>, transform_indices = @transform_2, window_bounds = array<i64: 8, 32>}, {transform_indices = @transform_3, window_bounds = array<i64: 2, 32, 256>}]} {
    %c0 = arith.constant 0 : index
    %c0_0 = arith.constant 0 : index
    %c0_1 = arith.constant 0 : index
    %0 = vector.load %arg1[%c0, %c0_0, %c0_1] : memref<2x32x256xf32, #tpu.memory_space<vmem>>, vector<2x32x256xf32>
    %cst = arith.constant dense<0.000000e+00> : vector<2x32xf32>
    %1 = vector.multi_reduction <add>, %0, %cst [2] : vector<2x32x256xf32> to vector<2x32xf32>
    %cst_2 = arith.constant 2.560000e+02 : f32
    %2 = vector.broadcast %cst_2 : f32 to vector<2x32xf32>
    %3 = arith.divf %1, %2 : vector<2x32xf32>
    %c0_3 = arith.constant 0 : index
    %c0_4 = arith.constant 0 : index
    %4 = vector.load %arg2[%c0_3, %c0_4] : memref<32x8xf32, #tpu.memory_space<vmem>>, vector<32x8xf32>
    %c0_5 = arith.constant 0 : index
    %c0_6 = arith.constant 0 : index
    %5 = vector.load %arg3[%c0_5, %c0_6] : memref<8x32xf32, #tpu.memory_space<vmem>>, vector<8x32xf32>
    %cst_7 = arith.constant dense<0.000000e+00> : vector<2x8xf32>
    %6 = tpu.matmul %3, %4, %cst_7 {dimension_numbers = #tpu.dot_dimension_numbers<[1], [0], [0], [1], [0, 0, 1, 1], [], []>} : vector<2x32xf32>, vector<32x8xf32>, vector<2x8xf32> -> vector<2x8xf32>
    %cst_8 = arith.constant 0.000000e+00 : f32
    %7 = vector.broadcast %cst_8 : f32 to vector<2x8xf32>
    %8 = arith.maximumf %6, %7 : vector<2x8xf32>
    %cst_9 = arith.constant dense<0.000000e+00> : vector<2x32xf32>
    %9 = tpu.matmul %8, %5, %cst_9 {dimension_numbers = #tpu.dot_dimension_numbers<[1], [0], [0], [1], [0, 0, 1, 1], [], []>} : vector<2x8xf32>, vector<8x32xf32>, vector<2x32xf32> -> vector<2x32xf32>
    %10 = arith.negf %9 : vector<2x32xf32>
    %11 = math.exp %10 : vector<2x32xf32>
    %cst_10 = arith.constant 1.000000e+00 : f32
    %12 = vector.broadcast %cst_10 : f32 to vector<2x32xf32>
    %13 = arith.addf %12, %11 : vector<2x32xf32>
    %14 = arith.divf %12, %13 : vector<2x32xf32>
    %15 = vector.shape_cast %14 : vector<2x32xf32> to vector<2x32x1xf32>
    %16 = vector.broadcast %15 : vector<2x32x1xf32> to vector<2x32x256xf32>
    %17 = arith.mulf %0, %16 : vector<2x32x256xf32>
    %c0_11 = arith.constant 0 : index
    %c0_12 = arith.constant 0 : index
    %c0_13 = arith.constant 0 : index
    %18 = vector.load %arg4[%c0_11, %c0_12, %c0_13] : memref<2x32x256xf32, #tpu.memory_space<vmem>>, vector<2x32x256xf32>
    tpu.vector_store %arg4[%c0_11, %c0_12, %c0_13], %17 {strides = array<i32>} : memref<2x32x256xf32, #tpu.memory_space<vmem>>, vector<2x32x256xf32>,
    return
  }
  func.func @transform_0(%arg0: i32) -> (i32, i32, i32) {
    %c0_i32 = arith.constant 0 : i32
    %c0_i32_0 = arith.constant 0 : i32
    %c0_i32_1 = arith.constant 0 : i32
    return %arg0, %c0_i32, %c0_i32_0 : i32, i32, i32
  }
  func.func @transform_1(%arg0: i32) -> (i32, i32) {
    %c0_i32 = arith.constant 0 : i32
    %c0_i32_0 = arith.constant 0 : i32
    %c0_i32_1 = arith.constant 0 : i32
    return %c0_i32, %c0_i32_0 : i32, i32
  }
  func.func @transform_2(%arg0: i32) -> (i32, i32) {
    %c0_i32 = arith.constant 0 : i32
    %c0_i32_0 = arith.constant 0 : i32
    %c0_i32_1 = arith.constant 0 : i32
    return %c0_i32, %c0_i32_0 : i32, i32
  }
  func.func @transform_3(%arg0: i32) -> (i32, i32, i32) {
    %c0_i32 = arith.constant 0 : i32
    %c0_i32_0 = arith.constant 0 : i32
    %c0_i32_1 = arith.constant 0 : i32
    return %arg0, %c0_i32, %c0_i32_0 : i32, i32, i32
  }
}

</mosaic_0001>

<bundles_post_ra>
// kernel: tpu_custom_call.1
= control target key start
LH: loop header
LB: loop body
LE: loop exit
PB: predicated region body
PF: predicated region fallthrough
CT: control target
= control target key end

     0   :  { %8 = vsyncpa [#allocation3], 0  ;;  %s577_s0 = inlined_call_operand.hbm [shape: f32[2,32,256], index: 0, kind: input, shape index: {}]   ;;  %s578_s1 = inlined_call_operand.vmem [shape: f32[32,8], index: 1, kind: input, shape index: {}]   ;;  %s579_s2 = inlined_call_operand.vmem [shape: f32[8,32], index: 2, kind: input, shape index: {}]   ;;  %s580_s3 = inlined_call_operand.hbm [shape: f32[2,32,256], index: 3, kind: output, shape index: {}]  }
   0x1   :  { %9 = vsyncpa [#allocation4], 0  ;;  %s460_s12 = smov [#allocation2]  }
   0x2   :  { %s15_s13 = sshll.u32 %s460_s12, 4  ;;  %s16_s13 = int_to_ptr.vmem [resolvable:$true] %s15_s13 }
   0x3   :  { %s424_s14 = scalar_lea.vmem %s16_s13, 2048  ;;  %p429_p1 = scmp.lt.s32.totalorder %s16_s13, %s16_s13 }
   0x4   :  { %p425_p0 = scmp.ne.s32.totalorder %s16_s13, %s424_s14  ;;  %p430_p2 = scmp.lt.s32.totalorder %s424_s14, %s424_s14 }
   0x6   :  { %p431_p3 = por %p430_p2, %p429_p1 }
   0x8   :  { %p432_p4 = pnand %p431_p3, %p425_p0 }
   0xa   :  { %435 = shalt.err (!%p432_p4)
}
   0xb   :  { %s461_s15 = smov 256   ;;  %s462_s16 = smov 16  }
   0xc   :  { %21 = dma.hbm_to_vmem [thread:$0]  %s577_s0, 2048, %s16_s13, [#allocation3], %s461_s15, %s461_s15, %s462_s16  }
   0xd   :  { %456 = dma.done.wait [#allocation3], 2048  }
   0xe   :  { %457 = vsyncadd [#allocation3], 4294965248  ;;  %v492_v0 = vld [vmem:[#allocation2 + $0x40] sm:$0xff]  ;;  %v494_v1 = vld [vmem:[#allocation2 + $0x48] sm:$0xff]  ;;  %v463_v24 = vmov 0.0   ;;  %vm464_vm0 = vmmov 0   ;;  %v91_v29 = vlaneseq }
   0xf   :  { %v496_v2 = vld [vmem:[#allocation2] sm:$0xff]  ;;  %v57_v3 = vadd.f32 %v494_v1, %v492_v0  ;;  %v500_v4 = vld [vmem:[#allocation2 + $0x8] sm:$0xff]  ;;  %v502_v5 = vld [vmem:[#allocation2 + $0x50] sm:$0xff]  ;;  %390 = vmatprep.subr.mxu0 %v463_v24  ;;  %401 = vmatprep.subr.mxu1 %v463_v24  ;;  %vm102_vm1 = vcmask 130112   ;;  %vm109_vm2 = vcmask 195712   ;;  %vm116_vm3 = vcmask 261312  }
  0x10   :  { %v504_v6 = vld [vmem:[#allocation2 + $0x58] sm:$0xff]  ;;  %v45_v7 = vadd.f32 %v500_v4, %v496_v2  ;;  %v508_v8 = vld [vmem:[#allocation2 + $0x10] sm:$0xff]  ;;  %v516_v12 = vld [vmem:[#allocation2 + $0x60] sm:$0xff]  ;;  %398 = vmatprep.mubr.msk.f32.mxu0 %vm464_vm0, %v463_v24  ;;  %403 = vmatprep.mubr.msk.f32.mxu1 %vm464_vm0, %v463_v24  ;;  %v92_v31 = vand.u32 127, %v91_v29  ;;  %v94_v36 = vshrl.u32 %v91_v29, 7  ;;  %vm137_vm4 = vcmask 1041409  }
  0x11   :  { %v510_v9 = vld [vmem:[#allocation2 + $0x18] sm:$0xff]  ;;  %58 = vadd.xlane.f32.xlu1 %v57_v3  ;;  %v60_v10 = vadd.f32 %v504_v6, %v502_v5  ;;  %v518_v13 = vld [vmem:[#allocation2 + $0x68] sm:$0xff]  ;;  %v520_v14 = vld [vmem:[#allocation2 + $0x20] sm:$0xff]  ;;  %vm139_vm5 = vcmask 261120   ;;  %vm213_vm6 = vcmask 64512  }
  0x12   :  { %46 = vadd.xlane.f32.xlu0 %v45_v7  ;;  %v48_v11 = vadd.f32 %v510_v9, %v508_v8  ;;  %v522_v15 = vld [vmem:[#allocation2 + $0x28] sm:$0xff]  ;;  %v63_v16 = vadd.f32 %v518_v13, %v516_v12  ;;  %v528_v18 = vld [vmem:[#allocation2 + $0x70] sm:$0xff]  ;;  %v530_v19 = vld [vmem:[#allocation2 + $0x78] sm:$0xff]  ;;  %v97_v33 = vadd.s32 4294967288, %v92_v31  ;;  %v104_v35 = vadd.s32 4294967280, %v92_v31 }
  0x13   :  { %v51_v17 = vadd.f32 %v522_v15, %v520_v14  ;;  %v532_v20 = vld [vmem:[#allocation2 + $0x30] sm:$0xff]  ;;  %v534_v21 = vld [vmem:[#allocation2 + $0x38] sm:$0xff]  ;;  %v66_v22 = vadd.f32 %v530_v19, %v528_v18  ;;  %v79_v27 = vld [vmem:[%s578_s1 + $0x8] sm:$0xff]  ;;  %v111_v40 = vadd.s32 4294967272, %v92_v31  ;;  %v95_v44 = vsub.s32 %v92_v31, %v94_v36 }
  0x14   :  { %v54_v23 = vadd.f32 %v534_v21, %v532_v20  ;;  %v81_v25 = vld [vmem:[%s578_s1 + $0x18] sm:$0xff]  ;;  %v80_v26 = vld [vmem:[%s578_s1 + $0x10] sm:$0xff]  ;;  %v78_v28 = vld [vmem:[%s578_s1] sm:$0xff]  ;;  %v100_v38 = vsub.s32 %v97_v33, %v94_v36  ;;  %v107_v42 = vsub.s32 %v104_v35, %v94_v36  ;;  %v295_v31 = vsub.s32 0, %v94_v36 }
  0x15   :  { %61 = vadd.xlane.f32.xlu1 %v60_v10  ;;  %391 = vmatpush3.msra.mxu0 %v81_v25  ;;  %v114_v51 = vsub.s32 %v111_v40, %v94_v36 }
  0x16   :  { %49 = vadd.xlane.f32.xlu0 %v48_v11  ;;  %392 = vmatprep.subr.mxu0 %v463_v24 }
  0x17   :  { %393 = vmatpush3.msra.mxu0 %v80_v26 }
  0x18   :  { %394 = vmatprep.subr.mxu0 %v463_v24 }
  0x19   :  { %64 = vadd.xlane.f32.xlu1 %v63_v16  ;;  %395 = vmatpush3.msra.mxu0 %v79_v27 }
  0x1a   :  { %52 = vadd.xlane.f32.xlu0 %v51_v17  ;;  %396 = vmatprep.subr.mxu0 %v463_v24 }
  0x1b   :  { %397 = vmatpush3.msra.mxu0 %v78_v28 }
  0x1d   :  { %67 = vadd.xlane.f32.xlu1 %v66_v22  ;;  %v82_v22 = vld [vmem:[%s579_s2] sm:$0xff]  ;;  %s465_s2 = smov [#allocation5]  }
  0x1e   :  { %55 = vadd.xlane.f32.xlu0 %v54_v23  ;;  %402 = vmatpush3.msra.mxu1 %v82_v22  ;;  %s368_s27 = sshll.u32 %s465_s2, 4  ;;  %s369_s27 = int_to_ptr.vmem [resolvable:$true] %s368_s27 }
  0x1f   :  { %s436_s28 = scalar_lea.vmem %s369_s27, 2048  ;;  %p441_p6 = scmp.lt.s32.totalorder %s369_s27, %s369_s27 }
  0x20   :  { %p437_p5 = scmp.ne.s32.totalorder %s369_s27, %s436_s28  ;;  %p442_p7 = scmp.lt.s32.totalorder %s436_s28, %s436_s28 }
  0x22   :  { %p443_p8 = por %p442_p7, %p441_p6 }
  0x24   :  { %p444_p9 = pnand %p443_p8, %p437_p5 }
  0x9a   :  { %v59_v30 = vpop.xlane.xlu1 %58 }
  0x9b   :  { %v47_v32 = vpop.xlane.xlu0 %46  ;;  %v74_v45 = vmul.f32 0.00390625, %v59_v30 }
  0x9c   :  { %v70_v48 = vmul.f32 0.00390625, %v47_v32 }
  0x9d   :  { %v121_v55 = vrot.slane %v74_v45, %v95_v44 }
  0x9e   :  { %v62_v34 = vpop.xlane.xlu1 %61  ;;  %v96_v59 = vrot.slane %v70_v48, %v95_v44 }
  0x9f   :  { %v50_v37 = vpop.xlane.xlu0 %49  ;;  %v75_v39 = vmul.f32 0.00390625, %v62_v34  ;;  %v314_v34 = vsub.s32 1, %v94_v36 }
  0xa0   :  { %v71_v41 = vmul.f32 0.00390625, %v50_v37 }
  0xa1   :  { %v125_v50 = vrot.slane %v75_v39, %v100_v38 }
  0xa2   :  { %v65_v43 = vpop.xlane.xlu1 %64  ;;  %v101_v52 = vrot.slane %v71_v41, %v100_v38 }
  0xa3   :  { %v76_v46 = vmul.f32 0.00390625, %v65_v43  ;;  %v53_v47 = vpop.xlane.xlu0 %52  ;;  %v126_v61 = vsel %vm102_vm1, %v125_v50, %v121_v55 }
  0xa4   :  { %v72_v49 = vmul.f32 0.00390625, %v53_v47  ;;  %v103_v63 = vsel %vm102_vm1, %v101_v52, %v96_v59 }
  0xa5   :  { %v130_v53 = vrot.slane %v76_v46, %v107_v42 }
  0xa6   :  { %v68_v54 = vpop.xlane.xlu1 %67  ;;  %v108_v56 = vrot.slane %v72_v49, %v107_v42 }
  0xa7   :  { %v77_v57 = vmul.f32 0.00390625, %v68_v54  ;;  %v56_v58 = vpop.xlane.xlu0 %55  ;;  %v131_v3 = vsel %vm109_vm2, %v130_v53, %v126_v61 }
  0xa8   :  { %v73_v60 = vmul.f32 0.00390625, %v56_v58  ;;  %v110_v10 = vsel %vm109_vm2, %v108_v56, %v103_v63 }
  0xa9   :  { %v135_v62 = vrot.slane %v77_v57, %v114_v51 }
  0xaa   :  { %v115_v7 = vrot.slane %v73_v60, %v114_v51 }
  0xab   :  { %v136_v11 = vsel %vm116_vm3, %v135_v62, %v131_v3 }
  0xac   :  { %v117_v16 = vsel %vm116_vm3, %v115_v7, %v110_v10 }
  0xad   :  { %v138_v17 = vsel %vm137_vm4, %v136_v11, %v117_v16 }
  0xae   :  { %399 = vmatmul.mubr.msk.f32.vlgmr.msra.gmra.mxu0 %vm139_vm5, %v138_v17 }
 0x16e   :  { %v208_v23 = vpop.f32.mrf.mxu0 }
 0x16f   :  { %v212_v24 = vmax.f32 %v208_v23, 0.0 }
 0x170   :  { %v400_v25 = vpop.f32.mrf.mxu0 }
 0x171   :  { %404 = vmatmul.mubr.msk.f32.vlgmr.msra.gmra.mxu1 %vm213_vm6, %v212_v24 }
 0x231   :  { %v283_v26 = vpop.f32.mrf.mxu1 }
 0x232   :  { %v382_v27 = vmul.f32 -1.442695, %v283_v26 }
 0x233   :  { %v405_v28 = vpop.f32.mrf.mxu1 }
 0x234   :  { %412 = vpow2.f32 %v382_v27 }
 0x241   :  { %v413_v29 = vpop.eup %412 }
 0x242   :  { %v290_v30 = vadd.f32 1.0, %v413_v29 }
 0x244   :  { %414 = vrcp.f32 %v290_v30 }
 0x251   :  { %v415_v32 = vpop.eup %414 }
 0x252   :  { %v296_v33 = vrot.slane %v415_v32, %v295_v31  ;;  %v315_v35 = vrot.slane %v415_v32, %v314_v34 }
 0x254   :  { %302 = vbcast.lane.b32.xlu1 %v296_v33, 264  ;;  %298 = vbcast.lane.b32.xlu0 %v296_v33, 256 }
 0x258   :  { %306 = vbcast.lane.b32.xlu1 %v296_v33, 272  ;;  %317 = vbcast.lane.b32.xlu0 %v315_v35, 256 }
 0x25c   :  { %310 = vbcast.lane.b32.xlu1 %v296_v33, 280  ;;  %325 = vbcast.lane.b32.xlu0 %v315_v35, 272 }
 0x260   :  { %321 = vbcast.lane.b32.xlu1 %v315_v35, 264 }
 0x264   :  { %329 = vbcast.lane.b32.xlu1 %v315_v35, 280 }
 0x2c6   :  { %v303_v37 = vpop.permute.xlu1 %302  ;;  %v299_v38 = vpop.permute.xlu0 %298 }
 0x2c7   :  { %v333_v39 = vmul.f32 %v303_v37, %v508_v8  ;;  %v334_v40 = vmul.f32 %v303_v37, %v510_v9  ;;  %v331_v41 = vmul.f32 %v299_v38, %v496_v2  ;;  %v332_v42 = vmul.f32 %v299_v38, %v500_v4 }
 0x2c9   :  { %349 = vst [vmem:[#allocation5 + $0x10] sm:$0xff] %v333_v39  ;;  %350 = vst [vmem:[#allocation5 + $0x18] sm:$0xff] %v334_v40 }
 0x2ca   :  { %347 = vst [vmem:[#allocation5] sm:$0xff] %v331_v41  ;;  %348 = vst [vmem:[#allocation5 + $0x8] sm:$0xff] %v332_v42  ;;  %v307_v36 = vpop.permute.xlu1 %306  ;;  %v318_v43 = vpop.permute.xlu0 %317 }
 0x2cb   :  { %v335_v44 = vmul.f32 %v307_v36, %v520_v14  ;;  %v336_v45 = vmul.f32 %v307_v36, %v522_v15  ;;  %v339_v46 = vmul.f32 %v318_v43, %v492_v0  ;;  %v340_v8 = vmul.f32 %v318_v43, %v494_v1 }
 0x2cd   :  { %351 = vst [vmem:[#allocation5 + $0x20] sm:$0xff] %v335_v44  ;;  %352 = vst [vmem:[#allocation5 + $0x28] sm:$0xff] %v336_v45 }
 0x2ce   :  { %355 = vst [vmem:[#allocation5 + $0x40] sm:$0xff] %v339_v46  ;;  %356 = vst [vmem:[#allocation5 + $0x48] sm:$0xff] %v340_v8  ;;  %v311_v2 = vpop.permute.xlu1 %310  ;;  %v326_v4 = vpop.permute.xlu0 %325 }
 0x2cf   :  { %v337_v9 = vmul.f32 %v311_v2, %v532_v20  ;;  %v338_v47 = vmul.f32 %v311_v2, %v534_v21  ;;  %v343_v48 = vmul.f32 %v326_v4, %v516_v12  ;;  %v344_v14 = vmul.f32 %v326_v4, %v518_v13 }
 0x2d1   :  { %353 = vst [vmem:[#allocation5 + $0x30] sm:$0xff] %v337_v9  ;;  %354 = vst [vmem:[#allocation5 + $0x38] sm:$0xff] %v338_v47 }
 0x2d2   :  { %359 = vst [vmem:[#allocation5 + $0x60] sm:$0xff] %v343_v48  ;;  %360 = vst [vmem:[#allocation5 + $0x68] sm:$0xff] %v344_v14  ;;  %v322_v0 = vpop.permute.xlu1 %321 }
 0x2d3   :  { %v341_v1 = vmul.f32 %v322_v0, %v502_v5  ;;  %v342_v15 = vmul.f32 %v322_v0, %v504_v6 }
 0x2d5   :  { %357 = vst [vmem:[#allocation5 + $0x50] sm:$0xff] %v341_v1  ;;  %358 = vst [vmem:[#allocation5 + $0x58] sm:$0xff] %v342_v15 }
 0x2d6   :  { %v330_v20 = vpop.permute.xlu1 %329 }
 0x2d7   :  { %v345_v21 = vmul.f32 %v330_v20, %v528_v18  ;;  %v346_v12 = vmul.f32 %v330_v20, %v530_v19 }
 0x2d9   :  { %361 = vst [vmem:[#allocation5 + $0x70] sm:$0xff] %v345_v21  ;;  %362 = vst [vmem:[#allocation5 + $0x78] sm:$0xff] %v346_v12 }
 0x2da   :  { %447 = shalt.err (!%p444_p9)
}
 0x2db   :  { %374 = dma.vmem_to_hbm [thread:$0]  %s369_s27, 2048, %s580_s3, [#allocation4], %s461_s15, %s461_s15, %s462_s16  }
 0x2dc   :  { %458 = dma.done.wait [#allocation4], 2048  }
 0x2dd   :  { %459 = vsyncadd [#allocation4], 4294965248 }
 0x2de   :  { %378 = vsyncpa [#allocation3], 1 }
 0x2df   :  { %379 = vsyncpa [#allocation4], 1 }

</bundles_post_ra>
